<compile_context>
chip_gen: v5e
topology: v5e:2x2
jax: 0.10.0
libtpu: 0.0.40
codegen_flags: <defaults>
</compile_context>

<pallas_src>
import jax
import jax.numpy as jnp
from jax.experimental import pallas as pl
from jax.experimental.pallas import tpu as pltpu

_MIB = 1024 * 1024
_LANE = 128
_MIN_STEPS = 8              # keep the 'parallel' axis busy (v7x 2 TCs + double-buffering)
_MIN_STEP_BYTES = 512 * 1024


def _tanh_der_kernel(x_ref, o_ref):
    # 1 - tanh(x)^2, computed in f32 (free at HBM roofline; exact no-op for f32 inputs).
    xf = x_ref[...].astype(jnp.float32)
    t = jnp.tanh(xf)
    o_ref[...] = (1.0 - t * t).astype(o_ref.dtype)


def _pick_width(n):
    # Widest lane-dense last dim that divides n exactly (n is 128-divisible here).
    for cand in (4096, 2048, 1024, 512, 256, 128):
        if n % cand == 0:
            return cand
    return _LANE


def _vmem_params():
    try:
        vmem_cap = int(pltpu.get_tpu_info().vmem_capacity_bytes)
    except Exception:
        vmem_cap = 64 * _MIB            # conservative fallback (v7x per-TC VMEM)
    # ~8 MiB blocks on every generation; never more than 1/8 of physical VMEM.
    target_block_bytes = max(2 * _MIB, min(8 * _MIB, vmem_cap // 8))
    # Scoped VMEM: 2 double-buffered arrays (in + out) at block size, plus headroom,
    # always well under physical capacity (64 MiB v7x, 128 MiB v5e/v6e).
    vmem_limit = 4 * target_block_bytes + 8 * _MIB
    vmem_limit = max(32 * _MIB, min(vmem_limit, vmem_cap - 16 * _MIB))
    return target_block_bytes, int(vmem_limit)


def _tanh_der_flat(flat, n):
    """Run the Pallas kernel on a flat, 128-divisible buffer of n elements."""
    dtype = flat.dtype
    itemsize = jnp.dtype(dtype).itemsize
    W = _pick_width(n)
    rows = n // W

    target_block_bytes, vmem_limit = _vmem_params()
    sub_mult = max(8, 32 // itemsize)    # 8 for f32, 16 for bf16, 32 for int8/fp8

    tr = max(1, target_block_bytes // (W * itemsize))
    # Large arrays: keep >= _MIN_STEPS grid steps so both v7x TensorCores get work
    # and the double-buffer pipeline actually overlaps DMA with compute.
    if rows * W * itemsize >= _MIN_STEPS * _MIN_STEP_BYTES:
        tr = min(tr, pl.cdiv(rows, _MIN_STEPS))
    tr = max(sub_mult, (tr // sub_mult) * sub_mult)
    if tr >= rows:
        tr = rows                        # full-extent block: (8,128) rule not required
    grid = (pl.cdiv(rows, tr),)          # ragged last block handled (masked) by Pallas

    x2d = flat.reshape(rows, W)
    out2d = pl.pallas_call(
        _tanh_der_kernel,
        out_shape=jax.ShapeDtypeStruct((rows, W), dtype),
        grid_spec=pltpu.PrefetchScalarGridSpec(
            num_scalar_prefetch=0,
            grid=grid,
            in_specs=[pl.BlockSpec((tr, W), lambda i: (i, 0))],
            out_specs=pl.BlockSpec((tr, W), lambda i: (i, 0)),
        ),
        compiler_params=pltpu.CompilerParams(
            dimension_semantics=("parallel",),   # v7x: row axis split across both TCs
            vmem_limit_bytes=vmem_limit,
        ),
        cost_estimate=pl.CostEstimate(
            flops=2 * n, transcendentals=n, bytes_accessed=2 * n * itemsize
        ),
    )(x2d)
    return out2d.reshape(-1)


def tanh_der(x: jax.Array) -> jax.Array:
    """Elementwise 1 - tanh(x)^2 via a Pallas TPU kernel (matches torch semantics)."""
    orig_shape = x.shape
    n = x.size
    if n == 0:
        return x
    flat = x.reshape(-1)

    rem = n % _LANE
    n_main = n - rem
    if rem == 0:
        return _tanh_der_flat(flat, n).reshape(orig_shape)

    # Ragged case: kernel on the largest 128-divisible prefix; the <128-element
    # tail is computed with plain jnp (no full-array pad + slice re-streaming).
    t_tail = jnp.tanh(flat[n_main:].astype(jnp.float32))
    tail = (1.0 - t_tail * t_tail).astype(x.dtype)
    if n_main == 0:
        return tail.reshape(orig_shape)
    main = _tanh_der_flat(flat[:n_main], n_main)
    return jnp.concatenate([main, tail]).reshape(orig_shape)


if __name__ == "__main__":
    key = jax.random.PRNGKey(0)
    # Small NCHW input consistent with typical conv-net activations.
    x = jax.random.normal(key, (2, 4, 16, 16), dtype=jnp.float32)

    y = jax.block_until_ready(tanh_der(x))
    ref = 1.0 - jnp.tanh(x) ** 2
    assert y.shape == x.shape and y.dtype == x.dtype
    assert bool(jnp.allclose(y, ref, atol=1e-5, rtol=1e-5))

    # Ragged (non-128-divisible) path sanity check.
    x2 = jax.random.normal(jax.random.PRNGKey(1), (2, 131), dtype=jnp.float32)
    y2 = jax.block_until_ready(tanh_der(x2))
    ref2 = 1.0 - jnp.tanh(x2) ** 2
    assert bool(jnp.allclose(y2, ref2, atol=1e-5, rtol=1e-5))

    print("KERNEL_OK")
</pallas_src>

<mosaic_0001>
module attributes {stable_mosaic.version = 11 : i64} {
  func.func @_tanh_der_kernel(%arg0: i32, %arg1: memref<1x2048xf32, #tpu.memory_space<vmem>>, %arg2: memref<1x2048xf32, #tpu.memory_space<vmem>>) attributes {dimension_semantics = [#tpu.dimension_semantics<parallel>], iteration_bounds = array<i64: 1>, scalar_prefetch = 0 : i64, scratch_operands = 0 : i64, tpu.core_type = #tpu.core_type<tc>, window_params = [{transform_indices = @transform_0, window_bounds = array<i64: 1, 2048>}, {transform_indices = @transform_1, window_bounds = array<i64: 1, 2048>}]} {
    %c0 = arith.constant 0 : index
    %c0_0 = arith.constant 0 : index
    %0 = vector.load %arg1[%c0, %c0_0] : memref<1x2048xf32, #tpu.memory_space<vmem>>, vector<1x2048xf32>
    %1 = math.tanh %0 : vector<1x2048xf32>
    %2 = arith.mulf %1, %1 : vector<1x2048xf32>
    %cst = arith.constant 1.000000e+00 : f32
    %3 = vector.broadcast %cst : f32 to vector<1x2048xf32>
    %4 = arith.subf %3, %2 : vector<1x2048xf32>
    %c0_1 = arith.constant 0 : index
    %c0_2 = arith.constant 0 : index
    %5 = vector.load %arg2[%c0_1, %c0_2] : memref<1x2048xf32, #tpu.memory_space<vmem>>, vector<1x2048xf32>
    tpu.vector_store %arg2[%c0_1, %c0_2], %4 {strides = array<i32>} : memref<1x2048xf32, #tpu.memory_space<vmem>>, vector<1x2048xf32>,
    return
  }
  func.func @transform_0(%arg0: i32) -> (i32, i32) {
    %c0_i32 = arith.constant 0 : i32
    %c0_i32_0 = arith.constant 0 : i32
    return %arg0, %c0_i32 : i32, i32
  }
  func.func @transform_1(%arg0: i32) -> (i32, i32) {
    %c0_i32 = arith.constant 0 : i32
    %c0_i32_0 = arith.constant 0 : i32
    return %arg0, %c0_i32 : i32, i32
  }
}

</mosaic_0001>

<bundles_post_ra>
// kernel: tpu_custom_call.1
= control target key start
LH: loop header
LB: loop body
LE: loop exit
PB: predicated region body
PF: predicated region fallthrough
CT: control target
= control target key end

     0   :  { %6 = vsyncpa [#allocation3], 0  ;;  %s126_s0 = inlined_call_operand.hbm [shape: f32[1,2048], index: 0, kind: input, shape index: {}]   ;;  %s127_s1 = inlined_call_operand.hbm [shape: f32[1,2048], index: 1, kind: output, shape index: {}]  }
   0x1   :  { %7 = vsyncpa [#allocation4], 0  ;;  %s13_s8 = sshll.u32 %s126_s0, 4  ;;  %s108_s9 = smov [#allocation2]   ;;  %s14_s8 = int_to_ptr.hbm [resolvable:$true] %s13_s8 }
   0x2   :  { %s15_s10 = sshll.u32 %s108_s9, 4  ;;  %s16_s10 = int_to_ptr.vmem [resolvable:$true] %s15_s10 }
   0x3   :  { %18 = dma.hbm_to_vmem [thread:$0]  %s14_s8, 256, %s16_s10, [#allocation3]  }
   0x4   :  { %104 = dma.done.wait [#allocation3], 256  }
   0x5   :  { %105 = vsyncadd [#allocation3], 4294967040  ;;  %v23_v0 = vld [vmem:[#allocation2] sm:$0xff]  ;;  %v24_v1 = vld [vmem:[#allocation2 + $0x8] sm:$0xff]  ;;  %s109_s11 = smov [#allocation5]   ;;  %s40_s0 = sshll.u32 %s127_s1, 4  ;;  %s41_s0 = int_to_ptr.hbm [resolvable:$true] %s40_s0 }
   0x6   :  { %52 = vtanh.f32 %v23_v0  ;;  %s38_s12 = sshll.u32 %s109_s11, 4  ;;  %s39_s12 = int_to_ptr.vmem [resolvable:$true] %s38_s12 }
   0x7   :  { %54 = vtanh.f32 %v24_v1 }
   0xc   :  { %v53_v2 = vpop.eup %52 }
   0xd   :  { %v55_v3 = vpop.eup %54  ;;  %v27_v4 = vmul.f32 %v53_v2, %v53_v2 }
   0xe   :  { %v28_v5 = vmul.f32 %v55_v3, %v55_v3 }
   0xf   :  { %v29_v6 = vsub.f32 1.0, %v27_v4 }
  0x10   :  { %v30_v7 = vsub.f32 1.0, %v28_v5 }
  0x11   :  { %31 = vst [vmem:[#allocation5] sm:$0xff] %v29_v6 }
  0x12   :  { %32 = vst [vmem:[#allocation5 + $0x8] sm:$0xff] %v30_v7 }
  0x13   :  { %43 = dma.vmem_to_hbm [thread:$0]  %s39_s12, 256, %s41_s0, [#allocation4]  }
  0x14   :  { %106 = dma.done.wait [#allocation4], 256  }
  0x15   :  { %107 = vsyncadd [#allocation4], 4294967040 }
  0x16   :  { %48 = vsyncpa [#allocation3], 1 }
  0x17   :  { %49 = vsyncpa [#allocation4], 1 }

</bundles_post_ra>
